<compile_context>
chip_gen: v7x
topology: tpu7x:2x2x1
jax: 0.10.0
libtpu: 0.0.40
codegen_flags: <defaults>
</compile_context>

<pallas_src>
import functools

import jax
import jax.numpy as jnp
from jax import lax
from jax.experimental import pallas as pl
from jax.experimental.pallas import tpu as pltpu


_LANES = 128
_TILE_BYTES = 2 * 1024 * 1024  # ~2 MiB per input tile (per perf review)


def _round_up(x, m):
    return ((x + m - 1) // m) * m


def _labels_to_slab(x, fill):
    """Flatten labels and pad to a small (rows, 128) f32 slab (rows mult of 8)."""
    flat = x.reshape(-1).astype(jnp.float32)
    n = flat.shape[0]
    rows = max(8, _round_up(-(-n // _LANES), 8))
    padded = jnp.full((rows * _LANES,), fill, dtype=jnp.float32).at[:n].set(flat)
    return padded.reshape(rows, _LANES), n


def _images_to_rows(x):
    """Flatten images into a (rows, 128) slab in native dtype (f32/bf16).

    No full-array copy in the common case (numel % 128 == 0: pure reshape);
    the rare ragged case pads only the lane tail (zeros on both operands,
    which contribute 0 to the MSE sum).
    """
    if x.dtype not in (jnp.float32, jnp.bfloat16):
        x = x.astype(jnp.float32)
    flat = x.reshape(-1)
    n = flat.shape[0]
    rem = n % _LANES
    if rem:
        flat = jnp.pad(flat, (0, _LANES - rem))
    rows = flat.shape[0] // _LANES
    return flat.reshape(rows, _LANES), n, rows


def _pick_tile_rows(rows, row_align, cap_rows):
    """Pick a tile row count (multiple of row_align) <= cap.

    Prefer a divisor of `rows` so the final block is full and no in-kernel
    mask is needed; fall back to the cap with a masked last tile.
    """
    cap_rows = max(row_align, (cap_rows // row_align) * row_align)
    default_t = min(cap_rows, _round_up(rows, row_align))
    best = 0
    for cand in range(default_t, 0, -row_align):
        if rows % cand == 0:
            best = cand
            break
    if best >= max(row_align, default_t // 2):
        return best
    return default_t


def _generator_loss_kernel(ol_ref, tl_ref, oi_ref, ti_ref, out_ref, acc_ref, *,
                           rows, tile_rows, need_mask, inv_n_img, inv_n_lab):
    i = pl.program_id(0)
    last = pl.num_programs(0) - 1

    @pl.when(i == 0)
    def _init():
        acc_ref[...] = jnp.zeros_like(acc_ref)

    # ---- MSE partial sum for this tile (VPU-only) ----
    diff = oi_ref[...].astype(jnp.float32) - ti_ref[...].astype(jnp.float32)
    d2 = diff * diff

    if need_mask:
        # Only the final (partial) block holds undefined padding rows.
        @pl.when(i == last)
        def _acc_masked():
            row_idx = i * tile_rows + lax.broadcasted_iota(
                jnp.int32, (tile_rows, _LANES), 0)
            masked = jnp.where(row_idx < rows, d2, 0.0)
            acc_ref[...] += jnp.sum(masked.reshape(-1, 8, _LANES), axis=0)

        @pl.when(i != last)
        def _acc_plain():
            acc_ref[...] += jnp.sum(d2.reshape(-1, 8, _LANES), axis=0)
    else:
        acc_ref[...] += jnp.sum(d2.reshape(-1, 8, _LANES), axis=0)

    @pl.when(i == last)
    def _finalize():
        # BCE over the small, resident label slab.  Padding (p=1, t=1)
        # contributes exactly 0 thanks to the -100 clamp (PyTorch BCELoss).
        p = ol_ref[...]
        t = tl_ref[...]
        log_p = jnp.maximum(jnp.log(p), -100.0)
        log_1mp = jnp.maximum(jnp.log(1.0 - p), -100.0)
        bce_sum = jnp.sum(-(t * log_p + (1.0 - t) * log_1mp))

        mse_sum = jnp.sum(acc_ref[...])
        out_ref[0, 0] = mse_sum * inv_n_img + 0.001 * (bce_sum * inv_n_lab)


def generator_loss(out_labels, target_labels, out_images, target_images):
    # Labels: tiny -> pad once on host with the (1,1) trick.
    ol_slab, n_lab = _labels_to_slab(out_labels, 1.0)
    tl_slab, _ = _labels_to_slab(target_labels, 1.0)
    # Images: native dtype (bf16 stays bf16), no host padding in common case.
    oi_slab, n_img, rows = _images_to_rows(out_images)
    ti_slab, _, _ = _images_to_rows(target_images)

    # Sublane alignment: 8 rows for f32 tiles, 16 if any slab is bf16-packed.
    any_bf16 = (oi_slab.dtype == jnp.bfloat16) or (ti_slab.dtype == jnp.bfloat16)
    row_align = 16 if any_bf16 else 8
    min_itemsize = min(jnp.dtype(oi_slab.dtype).itemsize,
                       jnp.dtype(ti_slab.dtype).itemsize)
    cap_rows = _TILE_BYTES // (_LANES * max(min_itemsize, 2))

    tile_rows = _pick_tile_rows(rows, row_align, cap_rows)
    need_mask = (rows % tile_rows) != 0
    num_tiles = pl.cdiv(rows, tile_rows)
    lr = ol_slab.shape[0]

    kernel = functools.partial(
        _generator_loss_kernel,
        rows=rows,
        tile_rows=tile_rows,
        need_mask=need_mask,
        inv_n_img=float(1.0 / n_img),
        inv_n_lab=float(1.0 / n_lab),
    )

    out = pl.pallas_call(
        kernel,
        out_shape=jax.ShapeDtypeStruct((1, 1), jnp.float32),
        grid=(num_tiles,),
        in_specs=[
            # Label slabs: constant block index -> DMA'd once, stay resident.
            pl.BlockSpec((lr, _LANES), lambda i: (0, 0)),
            pl.BlockSpec((lr, _LANES), lambda i: (0, 0)),
            # Image slabs: tiled over rows -> double-buffered pipelining.
            pl.BlockSpec((tile_rows, _LANES), lambda i: (i, 0)),
            pl.BlockSpec((tile_rows, _LANES), lambda i: (i, 0)),
        ],
        out_specs=pl.BlockSpec((1, 1), lambda i: (0, 0), memory_space=pltpu.SMEM),
        scratch_shapes=[pltpu.VMEM((8, _LANES), jnp.float32)],
        compiler_params=pltpu.CompilerParams(
            dimension_semantics=("arbitrary",)),
    )(ol_slab, tl_slab, oi_slab, ti_slab)
    return out[0, 0]


def _reference(out_labels, target_labels, out_images, target_images):
    ol = out_labels.astype(jnp.float32)
    tl = target_labels.astype(jnp.float32)
    bce = jnp.mean(
        -(tl * jnp.maximum(jnp.log(ol), -100.0)
          + (1.0 - tl) * jnp.maximum(jnp.log(1.0 - ol), -100.0)))
    oi = out_images.astype(jnp.float32)
    ti = target_images.astype(jnp.float32)
    mse = jnp.mean((oi - ti) ** 2)
    return mse + 0.001 * bce


if __name__ == "__main__":
    key = jax.random.PRNGKey(0)
    k1, k2, k3, k4, k5 = jax.random.split(key, 5)

    # ---- Case 1: lane-aligned images (pure reshape, no mask) ----
    batch, C, H, W = 2, 4, 16, 16
    out_labels = jax.nn.sigmoid(jax.random.normal(k1, (batch, 1), dtype=jnp.float32))
    target_labels = jnp.ones((batch, 1), dtype=jnp.float32)
    out_images = jax.random.normal(k2, (batch, C, H, W), dtype=jnp.float32)
    target_images = jax.random.normal(k3, (batch, C, H, W), dtype=jnp.float32)

    loss = generator_loss(out_labels, target_labels, out_images, target_images)
    jax.block_until_ready(loss)
    ref = _reference(out_labels, target_labels, out_images, target_images)
    assert jnp.allclose(loss, ref, rtol=1e-5, atol=1e-6), (loss, ref)

    # ---- Case 2: ragged images (exercises lane pad + masked final tile) ----
    oi2 = jax.random.normal(k4, (2, 3, 20, 20), dtype=jnp.float32)
    ti2 = jax.random.normal(k5, (2, 3, 20, 20), dtype=jnp.float32)
    loss2 = generator_loss(out_labels, target_labels, oi2, ti2)
    jax.block_until_ready(loss2)
    ref2 = _reference(out_labels, target_labels, oi2, ti2)
    assert jnp.allclose(loss2, ref2, rtol=1e-5, atol=1e-6), (loss2, ref2)

    print("KERNEL_OK")
</pallas_src>

<mosaic_0001>
module attributes {stable_mosaic.version = 11 : i64} {
  func.func @_generator_loss_kernel(%arg0: i32, %arg1: memref<8x128xf32, #tpu.memory_space<vmem>>, %arg2: memref<8x128xf32, #tpu.memory_space<vmem>>, %arg3: memref<16x128xf32, #tpu.memory_space<vmem>>, %arg4: memref<16x128xf32, #tpu.memory_space<vmem>>, %arg5: memref<1x1xf32, #tpu.memory_space<smem>>, %arg6: memref<8x128xf32, #tpu.memory_space<vmem>>) attributes {dimension_semantics = [#tpu.dimension_semantics<arbitrary>], iteration_bounds = array<i64: 1>, scalar_prefetch = 0 : i64, scratch_operands = 1 : i64, tpu.core_type = #tpu.core_type<tc>, window_params = [{pipeline_mode = #tpu.pipeline_mode<synchronous>, transform_indices = @transform_0, window_bounds = array<i64: 8, 128>}, {pipeline_mode = #tpu.pipeline_mode<synchronous>, transform_indices = @transform_1, window_bounds = array<i64: 8, 128>}, {transform_indices = @transform_2, window_bounds = array<i64: 16, 128>}, {transform_indices = @transform_3, window_bounds = array<i64: 16, 128>}, {transform_indices = @transform_4, window_bounds = array<i64: 1, 1>}]} {
    %c0_i32 = arith.constant 0 : i32
    %0 = arith.cmpi eq, %arg0, %c0_i32 : i32
    %1 = arith.extui %0 : i1 to i32
    %c0_i32_0 = arith.constant 0 : i32
    %2 = arith.cmpi ne, %1, %c0_i32_0 : i32
    scf.if %2 {
      %cst_10 = arith.constant 0.000000e+00 : f32
      %15 = vector.broadcast %cst_10 : f32 to vector<8x128xf32>
      %c0_11 = arith.constant 0 : index
      %c0_12 = arith.constant 0 : index
      %16 = vector.load %arg6[%c0_11, %c0_12] : memref<8x128xf32, #tpu.memory_space<vmem>>, vector<8x128xf32>
      tpu.vector_store %arg6[%c0_11, %c0_12], %15 {strides = array<i32>} : memref<8x128xf32, #tpu.memory_space<vmem>>, vector<8x128xf32>,
    } else {
    }
    %c0 = arith.constant 0 : index
    %c0_1 = arith.constant 0 : index
    %3 = vector.load %arg3[%c0, %c0_1] : memref<16x128xf32, #tpu.memory_space<vmem>>, vector<16x128xf32>
    %c0_2 = arith.constant 0 : index
    %c0_3 = arith.constant 0 : index
    %4 = vector.load %arg4[%c0_2, %c0_3] : memref<16x128xf32, #tpu.memory_space<vmem>>, vector<16x128xf32>
    %5 = arith.subf %3, %4 : vector<16x128xf32>
    %6 = arith.mulf %5, %5 : vector<16x128xf32>
    %c0_4 = arith.constant 0 : index
    %c0_5 = arith.constant 0 : index
    %7 = vector.load %arg6[%c0_4, %c0_5] : memref<8x128xf32, #tpu.memory_space<vmem>>, vector<8x128xf32>
    %8 = vector.shape_cast %6 : vector<16x128xf32> to vector<2x8x128xf32>
    %cst = arith.constant dense<0.000000e+00> : vector<8x128xf32>
    %9 = vector.multi_reduction <add>, %8, %cst [0] : vector<2x8x128xf32> to vector<8x128xf32>
    %10 = arith.addf %7, %9 : vector<8x128xf32>
    %c0_6 = arith.constant 0 : index
    %c0_7 = arith.constant 0 : index
    %11 = vector.load %arg6[%c0_6, %c0_7] : memref<8x128xf32, #tpu.memory_space<vmem>>, vector<8x128xf32>
    tpu.vector_store %arg6[%c0_6, %c0_7], %10 {strides = array<i32>} : memref<8x128xf32, #tpu.memory_space<vmem>>, vector<8x128xf32>,
    %c0_i32_8 = arith.constant 0 : i32
    %12 = arith.cmpi eq, %arg0, %c0_i32_8 : i32
    %13 = arith.extui %12 : i1 to i32
    %c0_i32_9 = arith.constant 0 : i32
    %14 = arith.cmpi ne, %13, %c0_i32_9 : i32
    scf.if %14 {
      %c0_10 = arith.constant 0 : index
      %c0_11 = arith.constant 0 : index
      %15 = vector.load %arg1[%c0_10, %c0_11] : memref<8x128xf32, #tpu.memory_space<vmem>>, vector<8x128xf32>
      %c0_12 = arith.constant 0 : index
      %c0_13 = arith.constant 0 : index
      %16 = vector.load %arg2[%c0_12, %c0_13] : memref<8x128xf32, #tpu.memory_space<vmem>>, vector<8x128xf32>
      %17 = math.log %15 : vector<8x128xf32>
      %cst_14 = arith.constant -1.000000e+02 : f32
      %18 = vector.broadcast %cst_14 : f32 to vector<8x128xf32>
      %19 = arith.maximumf %17, %18 : vector<8x128xf32>
      %cst_15 = arith.constant 1.000000e+00 : f32
      %20 = vector.broadcast %cst_15 : f32 to vector<8x128xf32>
      %21 = arith.subf %20, %15 : vector<8x128xf32>
      %22 = math.log %21 : vector<8x128xf32>
      %cst_16 = arith.constant -1.000000e+02 : f32
      %23 = vector.broadcast %cst_16 : f32 to vector<8x128xf32>
      %24 = arith.maximumf %22, %23 : vector<8x128xf32>
      %25 = arith.mulf %16, %19 : vector<8x128xf32>
      %cst_17 = arith.constant 1.000000e+00 : f32
      %26 = vector.broadcast %cst_17 : f32 to vector<8x128xf32>
      %27 = arith.subf %26, %16 : vector<8x128xf32>
      %28 = arith.mulf %27, %24 : vector<8x128xf32>
      %29 = arith.addf %25, %28 : vector<8x128xf32>
      %cst_18 = arith.constant 0.000000e+00 : f32
      %30 = vector.broadcast %cst_18 : f32 to vector<8x128xf32>
      %31 = arith.subf %30, %29 : vector<8x128xf32>
      %32 = vector.shape_cast %31 : vector<8x128xf32> to vector<1x8x128xf32>
      %cst_19 = arith.constant dense<0.000000e+00> : vector<1xf32>
      %33 = vector.multi_reduction <add>, %32, %cst_19 [1, 2] : vector<1x8x128xf32> to vector<1xf32>
      %34 = vector.shape_cast %33 : vector<1xf32> to vector<1x1x1xf32>
      %35 = vector.extract %34[0, 0, 0] : f32 from vector<1x1x1xf32>
      %c0_20 = arith.constant 0 : index
      %c0_21 = arith.constant 0 : index
      %36 = vector.load %arg6[%c0_20, %c0_21] : memref<8x128xf32, #tpu.memory_space<vmem>>, vector<8x128xf32>
      %37 = vector.shape_cast %36 : vector<8x128xf32> to vector<1x8x128xf32>
      %cst_22 = arith.constant dense<0.000000e+00> : vector<1xf32>
      %38 = vector.multi_reduction <add>, %37, %cst_22 [1, 2] : vector<1x8x128xf32> to vector<1xf32>
      %39 = vector.shape_cast %38 : vector<1xf32> to vector<1x1x1xf32>
      %40 = vector.extract %39[0, 0, 0] : f32 from vector<1x1x1xf32>
      %cst_23 = arith.constant 4.8828125E-4 : f32
      %41 = arith.mulf %40, %cst_23 : f32
      %cst_24 = arith.constant 5.000000e-01 : f32
      %42 = arith.mulf %35, %cst_24 : f32
      %cst_25 = arith.constant 1.000000e-03 : f32
      %43 = arith.mulf %cst_25, %42 : f32
      %44 = arith.addf %41, %43 : f32
      %c0_26 = arith.constant 0 : index
      %c0_27 = arith.constant 0 : index
      %45 = memref.load %arg5[%c0_26, %c0_27] : memref<1x1xf32, #tpu.memory_space<smem>>
      memref.store %44, %arg5[%c0_26, %c0_27] : memref<1x1xf32, #tpu.memory_space<smem>>
    } else {
    }
    return
  }
  func.func @transform_0(%arg0: i32) -> (i32, i32) {
    %c0_i32 = arith.constant 0 : i32
    %c0_i32_0 = arith.constant 0 : i32
    %c0_i32_1 = arith.constant 0 : i32
    return %c0_i32, %c0_i32_0 : i32, i32
  }
  func.func @transform_1(%arg0: i32) -> (i32, i32) {
    %c0_i32 = arith.constant 0 : i32
    %c0_i32_0 = arith.constant 0 : i32
    %c0_i32_1 = arith.constant 0 : i32
    return %c0_i32, %c0_i32_0 : i32, i32
  }
  func.func @transform_2(%arg0: i32) -> (i32, i32) {
    %c0_i32 = arith.constant 0 : i32
    %c0_i32_0 = arith.constant 0 : i32
    return %arg0, %c0_i32 : i32, i32
  }
  func.func @transform_3(%arg0: i32) -> (i32, i32) {
    %c0_i32 = arith.constant 0 : i32
    %c0_i32_0 = arith.constant 0 : i32
    return %arg0, %c0_i32 : i32, i32
  }
  func.func @transform_4(%arg0: i32) -> (i32, i32) {
    %c0_i32 = arith.constant 0 : i32
    %c0_i32_0 = arith.constant 0 : i32
    %c0_i32_1 = arith.constant 0 : i32
    return %c0_i32, %c0_i32_0 : i32, i32
  }
}

</mosaic_0001>

<bundles_post_ra>
// kernel: tpu_custom_call.1
= control target key start
LH: loop header
LB: loop body
LE: loop exit
PB: predicated region body
PF: predicated region fallthrough
CT: control target
= control target key end

     0   :  { %9 = vsyncpa [#allocation4], 0  ;;  %s357_s0 = inlined_call_operand.hbm [shape: f32[8,128], index: 0, kind: input, shape index: {}]   ;;  %s358_s1 = inlined_call_operand.hbm [shape: f32[8,128], index: 1, kind: input, shape index: {}]   ;;  %s359_s2 = inlined_call_operand.hbm [shape: f32[16,128], index: 2, kind: input, shape index: {}]   ;;  %s360_s3 = inlined_call_operand.hbm [shape: f32[16,128], index: 3, kind: input, shape index: {}]   ;;  %s361_s4 = inlined_call_operand.hbm [shape: f32[1,1], index: 4, kind: output, shape index: {}]  }
   0x1   :  { %10 = vsyncpa [#allocation7], 0 }
   0x2   :  { %11 = vsyncpa [#allocation10], 0 }
   0x3   :  { %12 = vsyncpa [#allocation5], 0  ;;  %s265_s15 = smov [#allocation6]   ;;  %s266_s17 = smov [#allocation3]  }
   0x4   :  { %s29_s16 = sshll.u32 %s265_s15, 4  ;;  %s19_s18 = sshll.u32 %s266_s17, 4  ;;  %s30_s16 = int_to_ptr.vmem [resolvable:$true] %s29_s16  ;;  %s20_s18 = int_to_ptr.vmem [resolvable:$true] %s19_s18 }
   0x5   :  { %s159_s21 = scalar_lea.hbm %s358_s1, 128 }
   0x6   :  { %p160_p0 = scmp.ne.s32.totalorder %s358_s1, %s159_s21  ;;  %p163_p1 = scmp.lt.u32.totalorder %s159_s21, %s358_s1 }
   0x8   :  { %p165_p2 = pnand %p163_p1, %p160_p0 }
   0xa   :  { %168 = shalt.err (!%p165_p2)
}
   0xb   :  { %s169_s26 = scalar_lea.vmem %s30_s16, 128  ;;  %p174_p4 = scmp.lt.s32.totalorder %s30_s16, %s30_s16 }
   0xc   :  { %p170_p3 = scmp.ne.s32.totalorder %s30_s16, %s169_s26  ;;  %p175_p5 = scmp.lt.s32.totalorder %s169_s26, %s169_s26 }
   0xe   :  { %p176_p6 = por %p175_p5, %p174_p4 }
  0x10   :  { %p177_p7 = pnand %p176_p6, %p170_p3 }
  0x12   :  { %180 = shalt.err (!%p177_p7)
}
  0x13   :  { %32 = dma.hbm_to_vmem [thread:$0]  %s358_s1, 128, %s30_s16, [#allocation7]  }
  0x14   :  { %s181_s5 = scalar_lea.hbm %s357_s0, 128 }
  0x15   :  { %p182_p8 = scmp.ne.s32.totalorder %s357_s0, %s181_s5  ;;  %p185_p9 = scmp.lt.u32.totalorder %s181_s5, %s357_s0 }
  0x17   :  { %p187_p10 = pnand %p185_p9, %p182_p8 }
  0x19   :  { %190 = shalt.err (!%p187_p10)
}
  0x1a   :  { %s191_s10 = scalar_lea.vmem %s20_s18, 128  ;;  %p196_p12 = scmp.lt.s32.totalorder %s20_s18, %s20_s18 }
  0x1b   :  { %p192_p11 = scmp.ne.s32.totalorder %s20_s18, %s191_s10  ;;  %p197_p13 = scmp.lt.s32.totalorder %s191_s10, %s191_s10 }
  0x1d   :  { %p198_p0 = por %p197_p13, %p196_p12 }
  0x1f   :  { %p199_p1 = pnand %p198_p0, %p192_p11 }
  0x21   :  { %202 = shalt.err (!%p199_p1)
}
  0x22   :  { %22 = dma.hbm_to_vmem [thread:$0]  %s357_s0, 128, %s20_s18, [#allocation4]  }
  0x23   :  { %s267_s12 = smov [#allocation8]   ;;  %s203_s16 = scalar_lea.hbm %s359_s2, 256 }
  0x24   :  { %s38_s13 = sshll.u32 %s267_s12, 4  ;;  %p204_p2 = scmp.ne.s32.totalorder %s359_s2, %s203_s16  ;;  %s39_s13 = int_to_ptr.vmem [resolvable:$true] %s38_s13 }
  0x25   :  { %p207_p3 = scmp.lt.u32.totalorder %s203_s16, %s359_s2 }
  0x27   :  { %p209_p4 = pnand %p207_p3, %p204_p2 }
  0x29   :  { %212 = shalt.err (!%p209_p4)
}
  0x2a   :  { %s213_s22 = scalar_lea.vmem %s39_s13, 256  ;;  %p218_p6 = scmp.lt.s32.totalorder %s39_s13, %s39_s13 }
  0x2b   :  { %p214_p5 = scmp.ne.s32.totalorder %s39_s13, %s213_s22  ;;  %p219_p7 = scmp.lt.s32.totalorder %s213_s22, %s213_s22 }
  0x2d   :  { %p220_p8 = por %p219_p7, %p218_p6 }
  0x2f   :  { %p221_p9 = pnand %p220_p8, %p214_p5 }
  0x31   :  { %224 = shalt.err (!%p221_p9)
}
  0x32   :  { %s268_s0 = smov 128   ;;  %s269_s18 = smov 8  }
  0x33   :  { %44 = dma.hbm_to_vmem [thread:$0]  %s359_s2, 256, %s39_s13, [#allocation7], %s268_s0, %s268_s0, %s269_s18  }
  0x34   :  { %s270_s25 = smov [#allocation9]   ;;  %s225_s29 = scalar_lea.hbm %s360_s3, 256 }
  0x35   :  { %s50_s26 = sshll.u32 %s270_s25, 4  ;;  %p226_p10 = scmp.ne.s32.totalorder %s360_s3, %s225_s29  ;;  %s51_s26 = int_to_ptr.vmem [resolvable:$true] %s50_s26 }
  0x36   :  { %p229_p11 = scmp.lt.u32.totalorder %s225_s29, %s360_s3 }
  0x38   :  { %p231_p12 = pnand %p229_p11, %p226_p10 }
  0x3a   :  { %234 = shalt.err (!%p231_p12)
}
  0x3b   :  { %s235_s8 = scalar_lea.vmem %s51_s26, 256  ;;  %p240_p0 = scmp.lt.s32.totalorder %s51_s26, %s51_s26 }
  0x3c   :  { %p236_p13 = scmp.ne.s32.totalorder %s51_s26, %s235_s8  ;;  %p241_p1 = scmp.lt.s32.totalorder %s235_s8, %s235_s8 }
  0x3e   :  { %p242_p2 = por %p241_p1, %p240_p0 }
  0x40   :  { %p243_p3 = pnand %p242_p2, %p236_p13 }
  0x42   :  { %246 = shalt.err (!%p243_p3)
}
  0x43   :  { %56 = dma.hbm_to_vmem [thread:$0]  %s360_s3, 256, %s51_s26, [#allocation10], %s268_s0, %s268_s0, %s269_s18  }
  0x44   :  { %257 = dma.done.wait [#allocation4], 128  }
  0x45   :  { %258 = vsyncadd [#allocation4], 4294967168 }
  0x46   :  { %259 = dma.done.wait [#allocation7], 384  }
  0x47   :  { %260 = vsyncadd [#allocation7], 4294966912 }
  0x48   :  { %261 = dma.done.wait [#allocation10], 256  }
  0x49   :  { %262 = vsyncadd [#allocation10], 4294967040  ;;  %v89_v0 = vld [vmem:[#allocation3] sm:$0xff]  ;;  %v90_v3 = vld [vmem:[#allocation6] sm:$0xff]  ;;  %s247_s16 = scalar_lea.hbm %s361_s4, 16 }
  0x4a   :  { %155 = vlog2.f32 %v89_v0  ;;  %v94_v1 = vsub.f32 1.0, %v89_v0  ;;  %v74_v5 = vld [vmem:[#allocation8] sm:$0xff]  ;;  %v75_v7 = vld [vmem:[#allocation8 + $0x8] sm:$0xff]  ;;  %v76_v8 = vld [vmem:[#allocation9] sm:$0xff]  ;;  %v99_v12 = vsub.f32 1.0, %v90_v3  ;;  %p248_p4 = scmp.ne.s32.totalorder %s361_s4, %s247_s16  ;;  %p251_p5 = scmp.lt.u32.totalorder %s247_s16, %s361_s4 }
  0x4b   :  { %v77_v9 = vld [vmem:[#allocation9 + $0x8] sm:$0xff]  ;;  %v78_v15 = vsub.f32 %v74_v5, %v76_v8 }
  0x4c   :  { %157 = vlog2.f32 %v94_v1  ;;  %v79_v16 = vsub.f32 %v75_v7, %v77_v9  ;;  %p253_p6 = pnand %p251_p5, %p248_p4 }
  0x4d   :  { %v80_v19 = vmul.f32 %v78_v15, %v78_v15 }
  0x4e   :  { %v81_v20 = vmul.f32 %v79_v16, %v79_v16 }
  0x50   :  { %v83_v22 = vadd.f32 %v81_v20, %v80_v19 }
  0x54   :  { %v156_v2 = vpop.eup %155 }
  0x55   :  { %v92_v4 = vmul.f32 0.6931472, %v156_v2 }
  0x56   :  { %v158_v6 = vpop.eup %157 }
  0x57   :  { %v93_v10 = vmax.f32 %v92_v4, -100.0  ;;  %v96_v11 = vmul.f32 0.6931472, %v158_v6 }
  0x59   :  { %v97_v13 = vmax.f32 %v96_v11, -100.0  ;;  %v98_v14 = vmul.f32 %v93_v10, %v90_v3 }
  0x5b   :  { %v100_v17 = vmul.f32 %v99_v12, %v97_v13 }
  0x5d   :  { %v101_v18 = vadd.f32 %v100_v17, %v98_v14 }
  0x5f   :  { %v102_v21 = vsub.f32 0.0, %v101_v18 }
  0x61   :  { %103 = vadd.xlane.f32.xlu0 %v102_v21 }
  0x65   :  { %113 = vadd.xlane.f32.xlu0 %v83_v22 }
  0xee   :  { %v104_v23 = vpop.xlane.xlu0 %103 }
  0xef   :  { %v105_v24 = vrot.slane %v104_v23, 4 }
  0xf1   :  { %v106_v25 = vadd.f32 %v105_v24, %v104_v23 }
  0xf2   :  { %v114_v26 = vpop.xlane.xlu0 %113 }
  0xf3   :  { %v107_v27 = vrot.slane %v106_v25, 2  ;;  %v115_v28 = vrot.slane %v114_v26, 4 }
  0xf5   :  { %v116_v29 = vadd.f32 %v115_v28, %v114_v26  ;;  %v108_v30 = vadd.f32 %v107_v27, %v106_v25 }
  0xf7   :  { %v117_v31 = vrot.slane %v116_v29, 2  ;;  %v109_v32 = vrot.slane %v108_v30, 1 }
  0xf9   :  { %v118_v33 = vadd.f32 %v117_v31, %v116_v29  ;;  %v110_v34 = vadd.f32 %v109_v32, %v108_v30 }
  0xfb   :  { %144 = vpush %v110_v34  ;;  %v119_v35 = vrot.slane %v118_v33, 1 }
  0xfd   :  { %v120_v36 = vadd.f32 %v119_v35, %v118_v33 }
  0xff   :  { %146 = vpush %v120_v36 }
 0x12c   :  { %s145_s3 = spop %144 }
 0x12d   :  { %s123_s10 = smul.f32 0.5, %s145_s3 }
 0x12f   :  { %s124_s1 = smul.f32 0.001, %s123_s10 }
 0x130   :  { %s147_s11 = spop %146 }
 0x131   :  { %s122_s12 = smul.f32 0.00048828125, %s147_s11 }
 0x133   :  { %s125_s13 = sadd.f32 %s124_s1, %s122_s12 }
 0x135   :  { %127 = sst [smem:[#allocation11]] %s125_s13 }
 0x136   :  { %256 = shalt.err (!%p253_p6)
}
 0x137   :  { %s271_s22 = smov [#allocation11]  }
 0x138   :  { %135 = dma.smem_to_hbm %s271_s22, 16, %s361_s4, [#allocation5]  }
 0x139   :  { %263 = dma.done.wait [#allocation5], 16  }
 0x13a   :  { %264 = vsyncadd [#allocation5], 4294967280 }
 0x13b   :  { %139 = sfence }
 0x13c   :  { %140 = vsyncpa [#allocation4], 1 }
 0x13d   :  { %141 = vsyncpa [#allocation7], 1 }
 0x13e   :  { %142 = vsyncpa [#allocation10], 1 }
 0x13f   :  { %143 = vsyncpa [#allocation5], 1 }

</bundles_post_ra>
